<compile_context>
chip_gen: v7x
topology: tpu7x:2x2x1
jax: 0.10.0
libtpu: 0.0.40
codegen_flags: <defaults>
</compile_context>

<pallas_src>
import jax
import jax.numpy as jnp
from jax.experimental import pallas as pl
from jax.experimental.pallas import tpu as pltpu


def mf_kernel(uids_ref, iids_ref, utab_ref, itab_ref, out_ref):
    """One grid step: score TB examples.

    uids_ref / iids_ref : (1, TB)  int32   ids of this step's examples
    utab_ref            : (K0, NU) float32 full user table (transposed), VMEM resident
    itab_ref            : (K0, NI) float32 full item table (transposed), VMEM resident
    out_ref             : (1, TB)  float32 lane-dense scores for this step
    """
    uids = uids_ref[...]                      # (1, TB)
    iids = iids_ref[...]                      # (1, TB)
    utab = utab_ref[...]                      # (K0, NU)
    itab = itab_ref[...]                      # (K0, NI)
    nu = utab.shape[1]
    ni = itab.shape[1]
    tb = uids.shape[1]

    # One-hot row-selection matrices built against a sublane iota, so the batch
    # stays on the lane axis (no transposes / relayouts anywhere in the kernel).
    u_sel = (jax.lax.broadcasted_iota(jnp.int32, (nu, tb), 0) == uids).astype(jnp.float32)
    i_sel = (jax.lax.broadcasted_iota(jnp.int32, (ni, tb), 0) == iids).astype(jnp.float32)

    # Gather on the MXU: emb[k, t] = table[k, ids[t]].
    u_emb = jnp.dot(utab, u_sel, preferred_element_type=jnp.float32,
                    precision=jax.lax.Precision.HIGHEST)       # (K0, TB)
    i_emb = jnp.dot(itab, i_sel, preferred_element_type=jnp.float32,
                    precision=jax.lax.Precision.HIGHEST)       # (K0, TB)

    # Per-example dot product: reduce K0 over sublanes; batch stays lane-dense.
    out_ref[...] = jnp.sum(u_emb * i_emb, axis=0, keepdims=True)   # (1, TB)


def mf_forward(user_table, item_table, user_ids, item_ids, *, tb=512):
    """Pallas equivalent of MF.forward(user, item) -> (B,) scores."""
    B = user_ids.shape[0]
    NU, K0 = user_table.shape
    NI, _ = item_table.shape

    # Batch tile: multiple of 128 (lane width), but no bigger than needed.
    TB = min(tb, 128 * pl.cdiv(B, 128))
    G = pl.cdiv(B, TB)
    B_pad = G * TB

    # Pad ids with 0 (always a valid row); padded scores are sliced off below.
    uids = jnp.pad(user_ids.astype(jnp.int32), (0, B_pad - B)).reshape(G, TB)
    iids = jnp.pad(item_ids.astype(jnp.int32), (0, B_pad - B)).reshape(G, TB)

    # Tables transposed to (K0, rows): the batch lives on the lane axis all the
    # way through the kernel (lane-dense compute and output).
    utab_t = user_table.T.astype(jnp.float32)        # (K0, NU)
    itab_t = item_table.T.astype(jnp.float32)        # (K0, NI)

    # Table-resident-in-VMEM fast path: conservative budget so it also fits
    # v7x's smaller (64 MiB physical / 32 MiB default scoped) VMEM.
    vmem_estimate = 4 * (utab_t.size + itab_t.size + (NU + NI + 4) * TB)
    assert vmem_estimate < 16 * 1024 * 1024, (
        "embedding tables too large for the VMEM-resident one-hot gather path")
    # TODO(synk): for embedding tables that do not fit VMEM, fall back to a
    # manual double-buffered DMA row-gather (memory_space=pl.ANY + make_async_copy).

    out = pl.pallas_call(
        mf_kernel,
        out_shape=jax.ShapeDtypeStruct((G, TB), jnp.float32),
        grid=(G,),
        in_specs=[
            pl.BlockSpec((1, TB), lambda g: (g, 0)),     # user ids tile
            pl.BlockSpec((1, TB), lambda g: (g, 0)),     # item ids tile
            pl.BlockSpec((K0, NU), lambda g: (0, 0)),    # whole user table (VMEM)
            pl.BlockSpec((K0, NI), lambda g: (0, 0)),    # whole item table (VMEM)
        ],
        out_specs=pl.BlockSpec((1, TB), lambda g: (g, 0)),
        compiler_params=pltpu.CompilerParams(
            dimension_semantics=("parallel",)),
    )(uids, iids, utab_t, itab_t)

    return out.reshape(-1)[:B]    # matches torch .reshape(-1) -> (B,)


if __name__ == "__main__":
    # Module hyper-params (small, consistent with MF(user_num, item_num, K0))
    user_num, item_num, K0 = 16, 24, 32
    B = 8

    key = jax.random.PRNGKey(0)
    k_u, k_i, k_uid, k_iid = jax.random.split(key, 4)

    # nn.init.normal_(std=0.01) -- deterministic synthetic weights
    user_table = (0.01 * jax.random.normal(k_u, (user_num, K0))).astype(jnp.float32)
    item_table = (0.01 * jax.random.normal(k_i, (item_num, K0))).astype(jnp.float32)

    user_ids = jax.random.randint(k_uid, (B,), 0, user_num, dtype=jnp.int32)
    item_ids = jax.random.randint(k_iid, (B,), 0, item_num, dtype=jnp.int32)

    p = mf_forward(user_table, item_table, user_ids, item_ids)
    p = jax.block_until_ready(p)

    # pure-JAX reference check
    ref = jnp.sum(jnp.take(user_table, user_ids, axis=0)
                  * jnp.take(item_table, item_ids, axis=0), axis=-1)
    assert p.shape == (B,)
    assert jnp.allclose(p, ref, atol=1e-6, rtol=1e-3), (p, ref)

    print("KERNEL_OK")
</pallas_src>

<mosaic_0001>
module attributes {stable_mosaic.version = 11 : i64} {
  func.func @mf_kernel(%arg0: i32, %arg1: memref<1x128xi32, #tpu.memory_space<vmem>>, %arg2: memref<1x128xi32, #tpu.memory_space<vmem>>, %arg3: memref<32x16xf32, #tpu.memory_space<vmem>>, %arg4: memref<32x24xf32, #tpu.memory_space<vmem>>, %arg5: memref<1x128xf32, #tpu.memory_space<vmem>>) attributes {dimension_semantics = [#tpu.dimension_semantics<parallel>], iteration_bounds = array<i64: 1>, scalar_prefetch = 0 : i64, scratch_operands = 0 : i64, tpu.core_type = #tpu.core_type<tc>, window_params = [{transform_indices = @transform_0, window_bounds = array<i64: 1, 128>}, {transform_indices = @transform_1, window_bounds = array<i64: 1, 128>}, {pipeline_mode = #tpu.pipeline_mode<synchronous>, transform_indices = @transform_2, window_bounds = array<i64: 32, 16>}, {pipeline_mode = #tpu.pipeline_mode<synchronous>, transform_indices = @transform_3, window_bounds = array<i64: 32, 24>}, {transform_indices = @transform_4, window_bounds = array<i64: 1, 128>}]} {
    %c0 = arith.constant 0 : index
    %c0_0 = arith.constant 0 : index
    %0 = vector.load %arg1[%c0, %c0_0] : memref<1x128xi32, #tpu.memory_space<vmem>>, vector<1x128xi32>
    %c0_1 = arith.constant 0 : index
    %c0_2 = arith.constant 0 : index
    %1 = vector.load %arg2[%c0_1, %c0_2] : memref<1x128xi32, #tpu.memory_space<vmem>>, vector<1x128xi32>
    %c0_3 = arith.constant 0 : index
    %c0_4 = arith.constant 0 : index
    %2 = vector.load %arg3[%c0_3, %c0_4] : memref<32x16xf32, #tpu.memory_space<vmem>>, vector<32x16xf32>
    %c0_5 = arith.constant 0 : index
    %c0_6 = arith.constant 0 : index
    %3 = vector.load %arg4[%c0_5, %c0_6] : memref<32x24xf32, #tpu.memory_space<vmem>>, vector<32x24xf32>
    %4 = tpu.iota {dimensions = array<i32: 0>} : vector<16x128xi32>
    %5 = vector.broadcast %0 : vector<1x128xi32> to vector<16x128xi32>
    %6 = arith.cmpi eq, %4, %5 : vector<16x128xi32>
    %7 = arith.extui %6 : vector<16x128xi1> to vector<16x128xi32>
    %8 = arith.sitofp %7 : vector<16x128xi32> to vector<16x128xf32>
    %9 = tpu.iota {dimensions = array<i32: 0>} : vector<24x128xi32>
    %10 = vector.broadcast %1 : vector<1x128xi32> to vector<24x128xi32>
    %11 = arith.cmpi eq, %9, %10 : vector<24x128xi32>
    %12 = arith.extui %11 : vector<24x128xi1> to vector<24x128xi32>
    %13 = arith.sitofp %12 : vector<24x128xi32> to vector<24x128xf32>
    %cst = arith.constant dense<0.000000e+00> : vector<32x128xf32>
    %14 = tpu.matmul %2, %8, %cst {dimension_numbers = #tpu.dot_dimension_numbers<[1], [0], [0], [1], [0, 0, 1, 1], [], []>, precision = #tpu.contract_precision<fp32>} : vector<32x16xf32>, vector<16x128xf32>, vector<32x128xf32> -> vector<32x128xf32>
    %cst_7 = arith.constant dense<0.000000e+00> : vector<32x128xf32>
    %15 = tpu.matmul %3, %13, %cst_7 {dimension_numbers = #tpu.dot_dimension_numbers<[1], [0], [0], [1], [0, 0, 1, 1], [], []>, precision = #tpu.contract_precision<fp32>} : vector<32x24xf32>, vector<24x128xf32>, vector<32x128xf32> -> vector<32x128xf32>
    %16 = arith.mulf %14, %15 : vector<32x128xf32>
    %cst_8 = arith.constant dense<0.000000e+00> : vector<128xf32>
    %17 = vector.multi_reduction <add>, %16, %cst_8 [0] : vector<32x128xf32> to vector<128xf32>
    %18 = vector.shape_cast %17 : vector<128xf32> to vector<1x128xf32>
    %c0_9 = arith.constant 0 : index
    %c0_10 = arith.constant 0 : index
    %19 = vector.load %arg5[%c0_9, %c0_10] : memref<1x128xf32, #tpu.memory_space<vmem>>, vector<1x128xf32>
    tpu.vector_store %arg5[%c0_9, %c0_10], %18 {strides = array<i32>} : memref<1x128xf32, #tpu.memory_space<vmem>>, vector<1x128xf32>,
    return
  }
  func.func @transform_0(%arg0: i32) -> (i32, i32) {
    %c0_i32 = arith.constant 0 : i32
    %c0_i32_0 = arith.constant 0 : i32
    return %arg0, %c0_i32 : i32, i32
  }
  func.func @transform_1(%arg0: i32) -> (i32, i32) {
    %c0_i32 = arith.constant 0 : i32
    %c0_i32_0 = arith.constant 0 : i32
    return %arg0, %c0_i32 : i32, i32
  }
  func.func @transform_2(%arg0: i32) -> (i32, i32) {
    %c0_i32 = arith.constant 0 : i32
    %c0_i32_0 = arith.constant 0 : i32
    %c0_i32_1 = arith.constant 0 : i32
    return %c0_i32, %c0_i32_0 : i32, i32
  }
  func.func @transform_3(%arg0: i32) -> (i32, i32) {
    %c0_i32 = arith.constant 0 : i32
    %c0_i32_0 = arith.constant 0 : i32
    %c0_i32_1 = arith.constant 0 : i32
    return %c0_i32, %c0_i32_0 : i32, i32
  }
  func.func @transform_4(%arg0: i32) -> (i32, i32) {
    %c0_i32 = arith.constant 0 : i32
    %c0_i32_0 = arith.constant 0 : i32
    return %arg0, %c0_i32 : i32, i32
  }
}

</mosaic_0001>

<bundles_post_ra>
// kernel: tpu_custom_call.1
= control target key start
LH: loop header
LB: loop body
LE: loop exit
PB: predicated region body
PF: predicated region fallthrough
CT: control target
= control target key end

     0   :  { %v28_v1 = vlaneseq  ;;  %vm55_vm0 = vcmask 130048   ;;  %vm656_vm1 = vcmask 195584   ;;  %s1950_s0 = inlined_call_operand.vmem [shape: s32[1,128], index: 0, kind: input, shape index: {}]   ;;  %s1951_s1 = inlined_call_operand.vmem [shape: s32[1,128], index: 1, kind: input, shape index: {}]   ;;  %s1952_s2 = inlined_call_operand.vmem [shape: f32[32,16], index: 2, kind: input, shape index: {}]   ;;  %s1953_s3 = inlined_call_operand.vmem [shape: f32[32,24], index: 3, kind: input, shape index: {}]   ;;  %s1954_s4 = inlined_call_operand.hbm [shape: f32[1,128], index: 4, kind: output, shape index: {}]  }
   0x1   :  { %v1298_v0 = vld [vmem:[%s1950_s0] ss:$0 sm:$0xff]  ;;  %v21_v4 = vld [vmem:[%s1952_s2 + $0x8] sm:$0xff] }
   0x2   :  { %v20_v2 = vld [vmem:[%s1952_s2] sm:$0xff]  ;;  %v29_v6 = vshrl.u32 %v28_v1, 7  ;;  %v60_v8 = vsel %vm55_vm0, %v21_v4, 0  ;;  %v25_v9 = vld [vmem:[%s1953_s3 + $0x8] sm:$0xff] }
   0x3   :  { %v1301_v3 = vld [vmem:[%s1951_s1] ss:$0 sm:$0xff]  ;;  %v57_v7 = vsel %vm55_vm0, %v20_v2, 0  ;;  %v1697_v11 = vand.u32 4294901760, %v60_v8  ;;  %v661_v13 = vsel %vm656_vm1, %v25_v9, 0 }
   0x4   :  { %v24_v5 = vld [vmem:[%s1953_s3] sm:$0xff]  ;;  %v1695_v10 = vand.u32 4294901760, %v57_v7  ;;  %v30_v14 = vadd.s32 8, %v29_v6  ;;  %vm35_vm2 = vcmp.eq.s32.totalorder %v29_v6, %v1298_v0  ;;  %vm46_vm3 = vcmp.eq.s32.totalorder %v29_v6, %v1301_v3 }
   0x5   :  { %v658_v12 = vsel %vm656_vm1, %v24_v5, 0  ;;  %v41_v15 = vadd.s32 16, %v29_v6 }
   0x6   :  { %9 = vsyncpa [#allocation3], 0  ;;  %v1646_v16 = vmov 0.0   ;;  %v1706_v19 = vsub.f32 %v57_v7, %v1695_v10  ;;  %v1709_v20 = vsub.f32 %v60_v8, %v1697_v11  ;;  %vm36_vm4 = vcmp.eq.s32.totalorder %v30_v14, %v1298_v0  ;;  %v22_v23 = vld [vmem:[%s1952_s2 + $0x10] sm:$0xff]  ;;  %v23_v29 = vld [vmem:[%s1952_s2 + $0x18] sm:$0xff] }
   0x7   :  { %v1299_v17 = vsel %vm35_vm2, 1.0, %v1646_v16  ;;  %v1302_v18 = vsel %vm46_vm3, 1.0, %v1646_v16  ;;  %vm47_vm5 = vcmp.eq.s32.totalorder %v30_v14, %v1301_v3  ;;  %v1300_v24 = vsel %vm36_vm4, 1.0, %v1646_v16  ;;  %vm1720_vm6 = vmpackc.low %vm36_vm4, %vm35_vm2  ;;  %v26_v57 = vld [vmem:[%s1953_s3 + $0x10] sm:$0xff]  ;;  %v27_v2 = vld [vmem:[%s1953_s3 + $0x18] sm:$0xff]  ;;  %s1649_s3 = smov [#allocation2]  }
   0x8   :  { %v1711_v21 = vsub.f32 %v1299_v17, %v1299_v17  ;;  %v1713_v22 = vsub.f32 %v1302_v18, %v1302_v18  ;;  %v1303_v26 = vsel %vm47_vm5, 1.0, %v1646_v16  ;;  %v137_v27 = vand.u32 4294901760, %v1706_v19  ;;  %vm1736_vm7 = vmpackc.low %vm47_vm5, %vm46_vm3  ;;  %s1290_s6 = sshll.u32 %s1649_s3, 4  ;;  %s1291_s6 = int_to_ptr.vmem [resolvable:$true] %s1290_s6 }
   0x9   :  { %v147_v28 = vand.u32 4294901760, %v1709_v20  ;;  %v1647_v30 = vmov 1.0|1.0   ;;  %v1733_v31 = vsub.f32 %v1300_v24, %v1300_v24  ;;  %v1740_v33 = vsub.f32 %v1303_v26, %v1303_v26  ;;  %s1622_s7 = scalar_lea.vmem %s1291_s6, 16  ;;  %s1626_s8 = scalar_lea.vmem %s1291_s6, 32 }
   0xa   :  { %1531 = vmatprep.subr.msk.bf16.mxu0 %vm1720_vm6, %v1647_v30  ;;  %vm1742_vm8 = vcmp.eq.s32.totalorder %v41_v15, %v1301_v3  ;;  %v1746_v35 = vand.u32 4294901760, %v658_v12  ;;  %1555 = vmatprep.subr.msk.bf16.mxu1 %vm1736_vm7, %v1647_v30  ;;  %v138_v36 = vsub.f32 %v1706_v19, %v137_v27  ;;  %v1760_v38 = vand.u32 4294901760, %v661_v13  ;;  %p1623_p0 = scmp.ne.s32.totalorder %s1291_s6, %s1622_s7  ;;  %p1627_p1 = scmp.lt.s32.totalorder %s1291_s6, %s1291_s6 }
   0xb   :  { %1533 = vmatpush3.bf16.msk.msra.mxu0 %vm1720_vm6, %v1647_v30  ;;  %v148_v37 = vsub.f32 %v1709_v20, %v147_v28  ;;  %v63_v39 = vsel %vm55_vm0, %v22_v23, 0  ;;  %1557 = vmatpush3.bf16.msk.msra.mxu1 %vm1736_vm7, %v1647_v30  ;;  %v66_v42 = vsel %vm55_vm0, %v23_v29, 0  ;;  %v178_v43 = vand.u32 4294901760, %v1711_v21  ;;  %p1628_p2 = scmp.lt.s32.totalorder %s1626_s8, %s1622_s7 }
   0xc   :  { %v1767_v40 = vsub.f32 %v658_v12, %v1746_v35  ;;  %v1769_v41 = vand.u32 4294901760, %v63_v39  ;;  %v139_v44 = vand.u32 4294901760, %v138_v36  ;;  %v1648_v46 = vmov 1.0  }
   0xd   :  { %v149_v45 = vand.u32 4294901760, %v148_v37  ;;  %1462 = vmatprep.subr.msk.mxu1 %vm1742_vm8, %v1648_v46  ;;  %v1777_v47 = vsub.f32 %v661_v13, %v1760_v38  ;;  %v1779_v48 = vand.u32 4294901760, %v66_v42  ;;  %v179_v51 = vsub.f32 %v1711_v21, %v178_v43  ;;  %p1629_p3 = por %p1628_p2, %p1627_p1 }
   0xe   :  { %v739_v49 = vand.u32 4294901760, %v1767_v40  ;;  %v1783_v50 = vsub.f32 %v63_v39, %v1769_v41  ;;  %v185_v52 = vand.u32 4294901760, %v1733_v31  ;;  %1402 = vmatprep.mubr.f32.mxu0 %v139_v44  ;;  %v780_v55 = vand.u32 4294901760, %v1713_v22 }
   0xf   :  { %v749_v53 = vand.u32 4294901760, %v1777_v47  ;;  %v1791_v54 = vsub.f32 %v66_v42, %v1779_v48  ;;  %v787_v56 = vand.u32 4294901760, %v1740_v33  ;;  %1403 = vmatmul.mubr.f32.vlgmr.msra.gmra.mrb[0].mxu0 %v149_v45  ;;  %1463 = vmatpush3.msk.msra.mxu1 %vm1742_vm8, %v1648_v46  ;;  %v180_v60 = vand.u32 4294901760, %v179_v51  ;;  %p1630_p4 = pnand %p1629_p3, %p1623_p0 }
  0x10   :  { %v740_v58 = vsub.f32 %v1767_v40, %v739_v49  ;;  %v157_v59 = vand.u32 4294901760, %v1783_v50  ;;  %v186_v61 = vsub.f32 %v1733_v31, %v185_v52  ;;  %v781_v0 = vsub.f32 %v1713_v22, %v780_v55 }
  0x11   :  { %v750_v62 = vsub.f32 %v1777_v47, %v749_v53  ;;  %v167_v63 = vand.u32 4294901760, %v1791_v54  ;;  %v788_v1 = vsub.f32 %v1740_v33, %v787_v56  ;;  %v664_v6 = vsel %vm656_vm1, %v26_v57, 0 }
  0x12   :  { %v741_v3 = vand.u32 4294901760, %v740_v58  ;;  %v158_v4 = vsub.f32 %v1783_v50, %v157_v59  ;;  %v187_v5 = vand.u32 4294901760, %v186_v61  ;;  %v782_v9 = vand.u32 4294901760, %v781_v0 }
  0x13   :  { %v751_v7 = vand.u32 4294901760, %v750_v62  ;;  %v168_v8 = vsub.f32 %v1791_v54, %v167_v63  ;;  %v789_v12 = vand.u32 4294901760, %v788_v1  ;;  %v1828_v15 = vand.u32 4294901760, %v664_v6 }
  0x14   :  { %1464 = vmatprep.mubr.f32.mxu1 %v741_v3  ;;  %v159_v13 = vand.u32 4294901760, %v158_v4  ;;  %v1534_v14 = vpack.c.bf16 %v187_v5, %v180_v60  ;;  %v667_v17 = vsel %vm656_vm1, %v27_v2, 0  ;;  %v1304_v26 = vsel %vm1742_vm8, 1.0, %v1646_v16 }
  0x15   :  { %1465 = vmatmul.mubr.f32.vlgmr.msra.gmra.mrb[0].mxu1 %v751_v7  ;;  %v169_v18 = vand.u32 4294901760, %v168_v8  ;;  %v1558_v23 = vpack.c.bf16 %v789_v12, %v782_v9  ;;  %v1831_v24 = vand.u32 4294901760, %v667_v17  ;;  %v1837_v29 = vsub.f32 %v664_v6, %v1828_v15 }
  0x16   :  { %1405 = vmatprep.mubr.f32.mxu0 %v159_v13  ;;  %1535 = vmatprep.subr.bf16.mxu0 %v1534_v14  ;;  %v793_v36 = vsub.f32 %v1304_v26, %v1304_v26  ;;  %v1538_v37 = vpack.c.bf16 %v1733_v31, %v1711_v21  ;;  %v1562_v62 = vpack.c.bf16 %v1740_v33, %v1713_v22 }
  0x17   :  { %1406 = vmatmul.mubr.f32.gmra.mrb[2].mxu0 %v169_v18  ;;  %1559 = vmatprep.subr.bf16.mxu1 %v1558_v23  ;;  %v1842_v39 = vsub.f32 %v667_v17, %v1831_v24  ;;  %v759_v42 = vand.u32 4294901760, %v1837_v29  ;;  %v1546_v0 = vpack.c.bf16 %v185_v52, %v178_v43 }
  0x18   :  { %1537 = vmatpush3.bf16.msra.mxu0 %v1534_v14  ;;  %1561 = vmatpush3.bf16.msra.mxu1 %v1558_v23  ;;  %v794_v44 = vand.u32 4294901760, %v793_v36 }
  0x19   :  { %v769_v16 = vand.u32 4294901760, %v1842_v39  ;;  %1412 = vmatprep.mubr.f32.mxu0 %v1695_v10  ;;  %1539 = vmatprep.subr.bf16.mxu0 %v1538_v37  ;;  %v760_v45 = vsub.f32 %v1837_v29, %v759_v42 }
  0x1a   :  { %v795_v51 = vsub.f32 %v793_v36, %v794_v44 }
  0x1b   :  { %v770_v57 = vsub.f32 %v1842_v39, %v769_v16  ;;  %1413 = vmatmul.mubr.f32.vlgmr.msra.gmra.mrb[0].mxu0 %v1697_v11  ;;  %v761_v58 = vand.u32 4294901760, %v760_v45 }
  0x1c   :  { %v796_v60 = vand.u32 4294901760, %v795_v51  ;;  %1415 = vmatprep.mubr.f32.mxu0 %v1769_v41  ;;  %1541 = vmatpush3.bf16.msra.mxu0 %v1538_v37 }
  0x1d   :  { %v771_v61 = vand.u32 4294901760, %v770_v57  ;;  %1543 = vmatprep.subr.msk.bf16.mxu0 %vm1720_vm6, %v1647_v30  ;;  %1467 = vmatprep.mubr.f32.mxu1 %v761_v58 }
  0x1e   :  { %1474 = vmatprep.subr.mxu1 %v796_v60 }
  0x1f   :  { %1468 = vmatmul.mubr.f32.gmra.mrb[2].mxu1 %v771_v61  ;;  %1416 = vmatmul.mubr.f32.gmra.mrb[2].mxu0 %v1779_v48 }
  0x20   :  { %1475 = vmatpush3.msra.mxu1 %v796_v60  ;;  %1476 = vmatprep.mubr.f32.mxu1 %v1746_v35 }
  0x21   :  { %1563 = vmatprep.subr.bf16.mxu1 %v1562_v62  ;;  %1422 = vmatprep.mubr.f32.mxu0 %v1706_v19  ;;  %v1570_v19 = vpack.c.bf16 %v787_v56, %v780_v55 }
  0x23   :  { %1477 = vmatmul.mubr.f32.vlgmr.msra.gmra.mrb[0].mxu1 %v1760_v38  ;;  %1423 = vmatmul.mubr.f32.vlgmr.msra.gmra.mrb[0].mxu0 %v1709_v20 }
  0x24   :  { %1479 = vmatprep.mubr.f32.mxu1 %v1828_v15  ;;  %1565 = vmatpush3.bf16.msra.mxu1 %v1562_v62 }
  0x25   :  { %1486 = vmatprep.subr.mxu1 %v793_v36  ;;  %1425 = vmatprep.mubr.f32.mxu0 %v1783_v50 }
  0x26   :  { %1545 = vmatpush3.bf16.msk.msra.mxu0 %vm1720_vm6, %v1647_v30 }
  0x27   :  { %1480 = vmatmul.mubr.f32.gmra.mrb[2].mxu1 %v1831_v24  ;;  %1426 = vmatmul.mubr.f32.gmra.mrb[2].mxu0 %v1791_v54 }
  0x28   :  { %1487 = vmatpush3.msra.mxu1 %v793_v36  ;;  %1488 = vmatprep.mubr.f32.mxu1 %v1767_v40 }
  0x29   :  { %1567 = vmatprep.subr.msk.bf16.mxu1 %vm1736_vm7, %v1647_v30  ;;  %1432 = vmatprep.mubr.f32.mxu0 %v137_v27 }
  0x2a   :  { %1547 = vmatprep.subr.bf16.mxu0 %v1546_v0 }
  0x2b   :  { %1489 = vmatmul.mubr.f32.vlgmr.msra.gmra.mrb[0].mxu1 %v1777_v47  ;;  %1433 = vmatmul.mubr.f32.vlgmr.msra.gmra.mrb[0].mxu0 %v147_v28 }
  0x2c   :  { %1491 = vmatprep.mubr.f32.mxu1 %v1837_v29  ;;  %1569 = vmatpush3.bf16.msk.msra.mxu1 %vm1736_vm7, %v1647_v30 }
  0x2d   :  { %1498 = vmatprep.subr.msk.mxu1 %vm1742_vm8, %v1648_v46  ;;  %1435 = vmatprep.mubr.f32.mxu0 %v157_v59 }
  0x2e   :  { %1549 = vmatpush3.bf16.msra.mxu0 %v1546_v0 }
  0x2f   :  { %1492 = vmatmul.mubr.f32.gmra.mrb[2].mxu1 %v1842_v39  ;;  %1436 = vmatmul.mubr.f32.gmra.mrb[2].mxu0 %v167_v63 }
  0x30   :  { %1499 = vmatpush3.msk.msra.mxu1 %vm1742_vm8, %v1648_v46  ;;  %1500 = vmatprep.mubr.f32.mxu1 %v739_v49 }
  0x31   :  { %1571 = vmatprep.subr.bf16.mxu1 %v1570_v19  ;;  %1442 = vmatprep.mubr.f32.mxu0 %v1695_v10 }
  0x32   :  { %1551 = vmatprep.subr.msk.bf16.mxu0 %vm1720_vm6, %v1647_v30 }
  0x33   :  { %1501 = vmatmul.mubr.f32.vlgmr.msra.gmra.mrb[0].mxu1 %v749_v53  ;;  %1443 = vmatmul.mubr.f32.vlgmr.msra.gmra.mrb[0].mxu0 %v1697_v11 }
  0x34   :  { %1503 = vmatprep.mubr.f32.mxu1 %v759_v42  ;;  %1573 = vmatpush3.bf16.msra.mxu1 %v1570_v19 }
  0x35   :  { %1510 = vmatprep.subr.mxu1 %v794_v44  ;;  %1445 = vmatprep.mubr.f32.mxu0 %v1769_v41 }
  0x36   :  { %1553 = vmatpush3.bf16.msk.msra.mxu0 %vm1720_vm6, %v1647_v30 }
  0x37   :  { %1504 = vmatmul.mubr.f32.gmra.mrb[2].mxu1 %v769_v16  ;;  %1446 = vmatmul.mubr.f32.gmra.mrb[2].mxu0 %v1779_v48 }
  0x38   :  { %1511 = vmatpush3.msra.mxu1 %v794_v44  ;;  %1512 = vmatprep.mubr.f32.mxu1 %v1746_v35 }
  0x39   :  { %1575 = vmatprep.subr.msk.bf16.mxu1 %vm1736_vm7, %v1647_v30  ;;  %1452 = vmatprep.mubr.f32.mxu0 %v1695_v10 }
  0x3b   :  { %1513 = vmatmul.mubr.f32.vlgmr.msra.gmra.mrb[0].mxu1 %v1760_v38  ;;  %1453 = vmatmul.mubr.f32.vlgmr.msra.gmra.mrb[0].mxu0 %v1697_v11 }
  0x3c   :  { %1515 = vmatprep.mubr.f32.mxu1 %v1828_v15  ;;  %1577 = vmatpush3.bf16.msk.msra.mxu1 %vm1736_vm7, %v1647_v30 }
  0x3d   :  { %1522 = vmatprep.subr.msk.mxu1 %vm1742_vm8, %v1648_v46  ;;  %1455 = vmatprep.mubr.f32.mxu0 %v1769_v41 }
  0x3f   :  { %1516 = vmatmul.mubr.f32.gmra.mrb[2].mxu1 %v1831_v24  ;;  %1456 = vmatmul.mubr.f32.gmra.mrb[2].mxu0 %v1779_v48 }
  0x40   :  { %1523 = vmatpush3.msk.msra.mxu1 %vm1742_vm8, %v1648_v46  ;;  %1524 = vmatprep.mubr.f32.mxu1 %v1746_v35 }
  0x43   :  { %1525 = vmatmul.mubr.f32.vlgmr.msra.gmra.mrb[0].mxu1 %v1760_v38 }
  0x44   :  { %1527 = vmatprep.mubr.f32.mxu1 %v1828_v15 }
  0x47   :  { %1528 = vmatmul.mubr.f32.gmra.mrb[2].mxu1 %v1831_v24 }
 0x10e   :  { %v1454_v10 = vpop.f32.mrb[0].mxu0 }
 0x10f   :  { %v634_v11 = vpop.f32.mrb[1].mxu0 }
 0x112   :  { %v1457_v20 = vpop.f32.mrb[2].mxu0 }
 0x113   :  { %v646_v21 = vpop.f32.mrb[3].mxu0 }
 0x116   :  { %v1526_v22 = vpop.f32.mrb[0].mxu1 }
 0x117   :  { %v1271_v25 = vmul.f32 %v1526_v22, %v1454_v10  ;;  %v1248_v27 = vpop.f32.mrb[1].mxu1 }
 0x118   :  { %v1270_v28 = vmul.f32 %v1248_v27, %v634_v11 }
 0x11a   :  { %v1274_v30 = vadd.f32 %v1271_v25, %v1270_v28  ;;  %v1529_v31 = vpop.f32.mrb[2].mxu1 }
 0x11b   :  { %v1273_v32 = vmul.f32 %v1529_v31, %v1457_v20  ;;  %v1260_v33 = vpop.f32.mrb[3].mxu1 }
 0x11c   :  { %v1272_v34 = vmul.f32 %v1260_v33, %v646_v21 }
 0x11e   :  { %v1275_v35 = vadd.f32 %v1274_v30, %v1272_v34 }
 0x120   :  { %v1276_v40 = vadd.f32 %v1275_v35, %v1273_v32 }
 0x122   :  { %v1277_v38 = vrot.slane %v1276_v40, 4 }
 0x124   :  { %v1278_v41 = vadd.f32 %v1277_v38, %v1276_v40 }
 0x126   :  { %v1279_v43 = vrot.slane %v1278_v41, 2 }
 0x128   :  { %v1280_v46 = vadd.f32 %v1279_v43, %v1278_v41 }
 0x12a   :  { %v1281_v47 = vrot.slane %v1280_v46, 1 }
 0x12c   :  { %v1282_v48 = vadd.f32 %v1281_v47, %v1280_v46 }
 0x12e   :  { %1283 = vst [vmem:[#allocation2] sm:$0x1] %v1282_v48 }
 0x12f   :  { %1633 = shalt.err (!%p1630_p4)
}
 0x130   :  { %s1634_s11 = scalar_lea.hbm %s1954_s4, 16 }
 0x131   :  { %p1635_p5 = scmp.ne.s32.totalorder %s1954_s4, %s1634_s11  ;;  %p1638_p6 = scmp.lt.u32.totalorder %s1634_s11, %s1954_s4 }
 0x133   :  { %p1640_p7 = pnand %p1638_p6, %p1635_p5 }
 0x135   :  { %1643 = shalt.err (!%p1640_p7)
}
 0x136   :  { %1293 = dma.vmem_to_hbm [thread:$0]  %s1291_s6, 16, %s1954_s4, [#allocation3]  }
 0x137   :  { %1644 = dma.done.wait [#allocation3], 16  }
 0x138   :  { %1645 = vsyncadd [#allocation3], 4294967280 }
 0x139   :  { %1297 = vsyncpa [#allocation3], 1 }

</bundles_post_ra>
